<compile_context>
chip_gen: v7x
topology: tpu7x:2x2x1
jax: 0.10.0
libtpu: 0.0.40
codegen_flags: <defaults>
</compile_context>

<pallas_src>
import functools

import jax
import jax.numpy as jnp
from jax.experimental import pallas as pl
from jax.experimental.pallas import tpu as pltpu

LANES = 128          # TPU lane width; every packed slab is 128 lanes wide
N_W_BLOCKS = 4       # w1 | w2 | w_act | w_a2c stacked along rows (512 rows)

# Rows of the small f32 aux slab (broadcast rows / matvec weights)
ROW_B1 = 0           # [be | bg]
ROW_B2 = 1           # [ab1 | c0b1 | c1b1]
ROW_BACT = 2         # ab2 at lanes [HS, HS+ACT)
ROW_WQ = 3           # 0.5*[c0w2 | c1w2] at lanes [HID, 3*HID)
ROW_QB = 4           # 0.5*(c0b2+c1b2) at lane HS+ACT
AUX_ROWS = 8


def _round_up(n, m):
    return ((n + m - 1) // m) * m


def _cdiv(a, b):
    return -(-a // b)


# ---------------------------------------------------------------------------
# Pallas kernel: fused ActorCritic.forward (ind = -1, a_i = 0, ppo = True)
# ---------------------------------------------------------------------------
def _actor_critic_kernel(s_ref, m_ref, g_ref, w_ref, aux_ref, out_ref,
                         *, hs, act, off_m, off_g):
    """s/m/g: (tb, S/M/G) activations; w_ref: (512,128) bf16; aux: (8,128) f32."""
    f32 = jnp.float32
    bf16 = jnp.bfloat16
    dot = lambda a, b: jnp.dot(a, b, preferred_element_type=f32)

    S = s_ref.shape[1]
    M = m_ref.shape[1]
    G = g_ref.shape[1]

    # Resident weight blocks (bf16, DMA'd once — constant index_map).
    w1_s = w_ref[0:S, :]                                # states  -> encoder cols
    w1_m = w_ref[off_m:off_m + M, :]                    # memory  -> encoder cols
    w1_g = w_ref[off_g:off_g + G, :]                    # goals   -> goal-enc cols
    w2 = w_ref[1 * LANES:2 * LANES, :]                  # actor/critic layer-1
    w_act = w_ref[2 * LANES:3 * LANES, :]               # actor head (cols shifted by HS)
    w_a2c = w_ref[3 * LANES:4 * LANES, :]               # actions -> critic layer-1

    # Broadcast bias / matvec rows (f32, tiny, resident).
    b1 = aux_ref[ROW_B1:ROW_B1 + 1, :]                  # (1,128)
    b2 = aux_ref[ROW_B2:ROW_B2 + 1, :]
    b_act = aux_ref[ROW_BACT:ROW_BACT + 1, :]
    wq = aux_ref[ROW_WQ:ROW_WQ + 1, :]
    qb = aux_ref[ROW_QB:ROW_QB + 1, :]

    # --- layer 1: encoder (tanh, lanes [0,hs)) + goal encoder (relu) ----------
    pre1 = (dot(s_ref[...].astype(bf16), w1_s)
            + dot(m_ref[...].astype(bf16), w1_m)
            + dot(g_ref[...].astype(bf16), w1_g)
            + b1)                                        # (tb,128) f32
    col = jax.lax.broadcasted_iota(jnp.int32, pre1.shape, 1)
    enc = jnp.where(col < hs, jnp.tanh(pre1), jnp.maximum(pre1, 0.0))

    # --- layer 2: actor + both critics' first layers in one dot ---------------
    pre2 = dot(enc.astype(bf16), w2) + b2                # cols [0,3*HID) used
    r_a = jnp.maximum(pre2, 0.0)

    # --- actor head: actions land directly in lanes [hs, hs+act) --------------
    actions = jnp.tanh(dot(r_a.astype(bf16), w_act) + b_act)

    # --- critics: add action term, relu, averaged q head as VPU*+XLU reduce ---
    crit_add = dot(actions.astype(bf16), w_a2c)
    r_c = jnp.maximum(pre2 + crit_add, 0.0)
    q_col = jnp.sum(r_c * wq, axis=-1, keepdims=True)    # (tb,1)  q = 0.5*(q0+q1) - bias

    # --- lane-dense output slab: [states_enc | actions | q | 0...] ------------
    out = jnp.where(col < hs, enc, 0.0)                  # states_enc in [0,hs)
    out = out + actions                                  # actions in [hs,hs+act)
    out = out + jnp.where(col == hs + act, q_col, 0.0) + qb   # q at lane hs+act
    out_ref[...] = out.astype(out_ref.dtype)


# ---------------------------------------------------------------------------
# One-time weight packing (hoist out of the per-call path)
# ---------------------------------------------------------------------------
def pack_actor_critic_params(params, weight_dtype=jnp.bfloat16):
    """Pack module params into (w_slab bf16 (512,128), aux f32 (8,128), meta)."""
    f32 = jnp.float32
    S, HS = params["we"].shape
    M = params["wm"].shape[0]
    G, HG = params["wg"].shape
    HID = params["awg"].shape[1]
    ACT = params["aw2"].shape[1]

    off_m = _round_up(S, 8)
    off_g = off_m + _round_up(M, 8)

    assert off_g + G <= LANES, "input feature blocks must fit 128 weight rows"
    assert HS + HG <= LANES and 3 * HID <= LANES and HS + ACT + 1 <= LANES

    w1 = jnp.zeros((LANES, LANES), f32)
    w1 = w1.at[0:S, 0:HS].set(params["we"])
    w1 = w1.at[off_m:off_m + M, 0:HS].set(params["wm"])
    w1 = w1.at[off_g:off_g + G, HS:HS + HG].set(params["wg"])

    w2 = jnp.zeros((LANES, LANES), f32)
    w2 = w2.at[0:HS, 0:HID].set(params["aws"])
    w2 = w2.at[HS:HS + HG, 0:HID].set(params["awg"])
    w2 = w2.at[0:HS, HID:2 * HID].set(params["c0ws"])
    w2 = w2.at[HS:HS + HG, HID:2 * HID].set(params["c0wg"])
    w2 = w2.at[0:HS, 2 * HID:3 * HID].set(params["c1ws"])
    w2 = w2.at[HS:HS + HG, 2 * HID:3 * HID].set(params["c1wg"])

    # Actor head: output columns pre-shifted by HS so actions land at [HS,HS+ACT)
    w_act = jnp.zeros((LANES, LANES), f32)
    w_act = w_act.at[0:HID, HS:HS + ACT].set(params["aw2"])

    # actions -> critic layer-1 (input rows shifted by HS to match)
    w_a2c = jnp.zeros((LANES, LANES), f32)
    w_a2c = w_a2c.at[HS:HS + ACT, HID:2 * HID].set(params["c0wa"])
    w_a2c = w_a2c.at[HS:HS + ACT, 2 * HID:3 * HID].set(params["c1wa"])

    w_slab = jnp.concatenate([w1, w2, w_act, w_a2c], axis=0).astype(weight_dtype)

    aux = jnp.zeros((AUX_ROWS, LANES), f32)
    aux = aux.at[ROW_B1, 0:HS].set(params["be"].reshape(HS))
    aux = aux.at[ROW_B1, HS:HS + HG].set(params["bg"].reshape(HG))
    aux = aux.at[ROW_B2, 0:HID].set(params["ab1"].reshape(HID))
    aux = aux.at[ROW_B2, HID:2 * HID].set(params["c0b1"].reshape(HID))
    aux = aux.at[ROW_B2, 2 * HID:3 * HID].set(params["c1b1"].reshape(HID))
    aux = aux.at[ROW_BACT, HS:HS + ACT].set(params["ab2"].reshape(ACT))
    # Pre-averaged critic heads: q = 0.5*(q0+q1)
    aux = aux.at[ROW_WQ, HID:2 * HID].set(0.5 * params["c0w2"].reshape(HID))
    aux = aux.at[ROW_WQ, 2 * HID:3 * HID].set(0.5 * params["c1w2"].reshape(HID))
    aux = aux.at[ROW_QB, HS + ACT].set(
        0.5 * (params["c0b2"].reshape(()) + params["c1b2"].reshape(())))

    meta = dict(S=S, M=M, G=G, HS=HS, HG=HG, HID=HID, ACT=ACT,
                off_m=off_m, off_g=off_g)
    return w_slab, aux, meta


# ---------------------------------------------------------------------------
# Forward wrapper
# ---------------------------------------------------------------------------
def actor_critic_forward(goals, states, memory, w_slab, aux, meta, *, tb=None):
    """Fused ActorCritic forward. Returns (q, actions, states_enc) as f32."""
    goals = jnp.asarray(goals)
    states = jnp.asarray(states)
    memory = jnp.asarray(memory)

    B = states.shape[0]
    S, M, G = meta["S"], meta["M"], meta["G"]
    HS, ACT = meta["HS"], meta["ACT"]
    assert states.shape[1] == S and memory.shape[1] == M and goals.shape[1] == G

    # Batch tiling: one tile up to 256 rows; above that use big tiles but keep
    # at least 2 grid steps so ("parallel",) shards across v7x's 2 TensorCores.
    if tb is None:
        if B <= 256:
            tb = _round_up(B, 8)
        else:
            tb = min(1024, _round_up(_cdiv(B, 2), 8))
    num_tiles = _cdiv(B, tb)

    kernel = functools.partial(_actor_critic_kernel, hs=HS, act=ACT,
                               off_m=meta["off_m"], off_g=meta["off_g"])

    flops = 2 * B * LANES * (S + M + G + 3 * LANES) + 2 * B * LANES
    bytes_accessed = (B * (S + M + G) * states.dtype.itemsize
                      + B * LANES * 2
                      + w_slab.size * w_slab.dtype.itemsize
                      + aux.size * 4)
    cost = pl.CostEstimate(flops=int(flops),
                           transcendentals=int(2 * B * LANES),
                           bytes_accessed=int(bytes_accessed))

    out = pl.pallas_call(
        kernel,
        out_shape=jax.ShapeDtypeStruct((B, LANES), jnp.bfloat16),
        grid_spec=pltpu.PrefetchScalarGridSpec(
            num_scalar_prefetch=0,
            grid=(num_tiles,),
            in_specs=[
                pl.BlockSpec((tb, S), lambda i: (i, 0)),               # states
                pl.BlockSpec((tb, M), lambda i: (i, 0)),               # memory
                pl.BlockSpec((tb, G), lambda i: (i, 0)),               # goals
                pl.BlockSpec((N_W_BLOCKS * LANES, LANES),
                             lambda i: (0, 0)),                        # resident weights
                pl.BlockSpec((AUX_ROWS, LANES), lambda i: (0, 0)),     # bias/matvec rows
            ],
            out_specs=pl.BlockSpec((tb, LANES), lambda i: (i, 0)),
        ),
        compiler_params=pltpu.CompilerParams(
            dimension_semantics=("parallel",),
            vmem_limit_bytes=32 * 1024 * 1024,
        ),
        cost_estimate=cost,
    )(states, memory, goals, w_slab, aux)

    states_enc = out[:, 0:HS].astype(jnp.float32)
    actions = out[:, HS:HS + ACT].astype(jnp.float32)
    q = out[:, HS + ACT:HS + ACT + 1].astype(jnp.float32)
    return q, actions, states_enc


# ---------------------------------------------------------------------------
# Deterministic parameter init (unpacked, same layout as the torch module)
# ---------------------------------------------------------------------------
def init_params(key, g_dim, s_dim, m_dim, hs, hg, hid, act_dim):
    ks = iter(jax.random.split(key, 32))

    def u(k_, shape, fan_in):
        s = 1.0 / jnp.sqrt(jnp.float32(fan_in))
        return jax.random.uniform(k_, shape, jnp.float32, -s, s)

    p = {}
    p["we"] = u(next(ks), (s_dim, hs), s_dim)
    p["wm"] = u(next(ks), (m_dim, hs), m_dim)
    p["be"] = u(next(ks), (1, hs), s_dim)
    p["wg"] = u(next(ks), (g_dim, hg), g_dim)
    p["bg"] = u(next(ks), (1, hg), g_dim)
    p["awg"] = u(next(ks), (hg, hid), hg)
    p["aws"] = u(next(ks), (hs, hid), hs)
    p["ab1"] = u(next(ks), (1, hid), hs)
    p["aw2"] = u(next(ks), (hid, act_dim), hid)
    p["ab2"] = u(next(ks), (1, act_dim), hid)
    for c in ("c0", "c1"):
        p[c + "wg"] = u(next(ks), (hg, hid), hg)
        p[c + "ws"] = u(next(ks), (hs, hid), hs)
        p[c + "wa"] = u(next(ks), (act_dim, hid), act_dim)
        p[c + "b1"] = u(next(ks), (1, hid), hs)
        p[c + "w2"] = u(next(ks), (hid, 1), hid)
        p[c + "b2"] = u(next(ks), (1, 1), hid)
    return p


def reference_forward(goals, states, memory, params):
    """Pure-JAX f32 reference of the original (unfused) forward."""
    s_enc = jnp.tanh(states @ params["we"] + memory @ params["wm"] + params["be"])
    g_enc = jnp.maximum(goals @ params["wg"] + params["bg"], 0.0)
    h = jnp.maximum(g_enc @ params["awg"] + s_enc @ params["aws"] + params["ab1"], 0.0)
    a = jnp.tanh(h @ params["aw2"] + params["ab2"])
    qs = []
    for c in ("c0", "c1"):
        hc = jnp.maximum(g_enc @ params[c + "wg"] + s_enc @ params[c + "ws"]
                         + a @ params[c + "wa"] + params[c + "b1"], 0.0)
        qs.append(hc @ params[c + "w2"] + params[c + "b2"])
    q = jnp.concatenate(qs, axis=1).mean(axis=1, keepdims=True)
    return q, a, s_enc


if __name__ == "__main__":
    G_DIM, S_DIM, M_DIM = 16, 32, 32
    HS, HG, HID, ACT = 32, 16, 32, 4

    key = jax.random.PRNGKey(0)
    kp, kd = jax.random.split(key)
    params = init_params(kp, G_DIM, S_DIM, M_DIM, HS, HG, HID, ACT)

    # Pack weights ONCE (hoisted out of the per-call path).
    w_slab, aux, meta = pack_actor_critic_params(params)
    jax.block_until_ready((w_slab, aux))

    # Small single-tile case + a multi-tile case (2 parallel grid steps).
    for B in (8, 512):
        kg, ks, km, kd = jax.random.split(kd, 4)
        goals = jax.random.normal(kg, (B, G_DIM), jnp.float32)
        states = jax.random.normal(ks, (B, S_DIM), jnp.float32)
        memory = jax.random.normal(km, (B, M_DIM), jnp.float32)

        q, actions, states_enc = actor_critic_forward(
            goals, states, memory, w_slab, aux, meta)
        jax.block_until_ready((q, actions, states_enc))

        q_ref, a_ref, s_ref = reference_forward(goals, states, memory, params)
        assert q.shape == (B, 1) and actions.shape == (B, ACT)
        assert states_enc.shape == (B, HS)
        # bf16 weights/activations on the MXU path -> compare with loose tolerance.
        assert jnp.allclose(q, q_ref, atol=2e-2, rtol=2e-2), f"q mismatch (B={B})"
        assert jnp.allclose(actions, a_ref, atol=2e-2, rtol=2e-2), f"actions mismatch (B={B})"
        assert jnp.allclose(states_enc, s_ref, atol=2e-2, rtol=2e-2), f"states_enc mismatch (B={B})"

    # TODO(synk): the torch actor returns a distribution object; only its mean
    # (dist.params(ppo)) is produced here — sampling/log_prob are not translated.
    print("KERNEL_OK")
</pallas_src>

<mosaic_0001>
module attributes {stable_mosaic.version = 11 : i64} {
  func.func @_actor_critic_kernel(%arg0: i32, %arg1: memref<8x32xf32, #tpu.memory_space<vmem>>, %arg2: memref<8x32xf32, #tpu.memory_space<vmem>>, %arg3: memref<8x16xf32, #tpu.memory_space<vmem>>, %arg4: memref<512x128xbf16, #tpu.memory_space<vmem>>, %arg5: memref<8x128xf32, #tpu.memory_space<vmem>>, %arg6: memref<8x128xbf16, #tpu.memory_space<vmem>>) attributes {dimension_semantics = [#tpu.dimension_semantics<parallel>], iteration_bounds = array<i64: 1>, scalar_prefetch = 0 : i64, scratch_operands = 0 : i64, tpu.core_type = #tpu.core_type<tc>, window_params = [{transform_indices = @transform_0, window_bounds = array<i64: 8, 32>}, {transform_indices = @transform_1, window_bounds = array<i64: 8, 32>}, {transform_indices = @transform_2, window_bounds = array<i64: 8, 16>}, {pipeline_mode = #tpu.pipeline_mode<synchronous>, transform_indices = @transform_3, window_bounds = array<i64: 512, 128>}, {pipeline_mode = #tpu.pipeline_mode<synchronous>, transform_indices = @transform_4, window_bounds = array<i64: 8, 128>}, {transform_indices = @transform_5, window_bounds = array<i64: 8, 128>}]} {
    %c0 = arith.constant 0 : index
    %c0_0 = arith.constant 0 : index
    %0 = vector.load %arg4[%c0, %c0_0] : memref<512x128xbf16, #tpu.memory_space<vmem>>, vector<32x128xbf16>
    %c32 = arith.constant 32 : index
    %c0_1 = arith.constant 0 : index
    %1 = vector.load %arg4[%c32, %c0_1] : memref<512x128xbf16, #tpu.memory_space<vmem>>, vector<32x128xbf16>
    %c64 = arith.constant 64 : index
    %c0_2 = arith.constant 0 : index
    %2 = vector.load %arg4[%c64, %c0_2] : memref<512x128xbf16, #tpu.memory_space<vmem>>, vector<16x128xbf16>
    %c128 = arith.constant 128 : index
    %c0_3 = arith.constant 0 : index
    %3 = vector.load %arg4[%c128, %c0_3] : memref<512x128xbf16, #tpu.memory_space<vmem>>, vector<128x128xbf16>
    %c256 = arith.constant 256 : index
    %c0_4 = arith.constant 0 : index
    %4 = vector.load %arg4[%c256, %c0_4] : memref<512x128xbf16, #tpu.memory_space<vmem>>, vector<128x128xbf16>
    %c384 = arith.constant 384 : index
    %c0_5 = arith.constant 0 : index
    %5 = vector.load %arg4[%c384, %c0_5] : memref<512x128xbf16, #tpu.memory_space<vmem>>, vector<128x128xbf16>
    %c0_6 = arith.constant 0 : index
    %c0_7 = arith.constant 0 : index
    %6 = vector.load %arg5[%c0_6, %c0_7] : memref<8x128xf32, #tpu.memory_space<vmem>>, vector<1x128xf32>
    %c1 = arith.constant 1 : index
    %c0_8 = arith.constant 0 : index
    %7 = vector.load %arg5[%c1, %c0_8] : memref<8x128xf32, #tpu.memory_space<vmem>>, vector<1x128xf32>
    %c2 = arith.constant 2 : index
    %c0_9 = arith.constant 0 : index
    %8 = vector.load %arg5[%c2, %c0_9] : memref<8x128xf32, #tpu.memory_space<vmem>>, vector<1x128xf32>
    %c3 = arith.constant 3 : index
    %c0_10 = arith.constant 0 : index
    %9 = vector.load %arg5[%c3, %c0_10] : memref<8x128xf32, #tpu.memory_space<vmem>>, vector<1x128xf32>
    %c4 = arith.constant 4 : index
    %c0_11 = arith.constant 0 : index
    %10 = vector.load %arg5[%c4, %c0_11] : memref<8x128xf32, #tpu.memory_space<vmem>>, vector<1x128xf32>
    %c0_12 = arith.constant 0 : index
    %c0_13 = arith.constant 0 : index
    %11 = vector.load %arg1[%c0_12, %c0_13] : memref<8x32xf32, #tpu.memory_space<vmem>>, vector<8x32xf32>
    %12 = arith.truncf %11 : vector<8x32xf32> to vector<8x32xbf16>
    %cst = arith.constant dense<0.000000e+00> : vector<8x128xf32>
    %13 = tpu.matmul %12, %0, %cst {dimension_numbers = #tpu.dot_dimension_numbers<[1], [0], [0], [1], [0, 0, 1, 1], [], []>} : vector<8x32xbf16>, vector<32x128xbf16>, vector<8x128xf32> -> vector<8x128xf32>
    %c0_14 = arith.constant 0 : index
    %c0_15 = arith.constant 0 : index
    %14 = vector.load %arg2[%c0_14, %c0_15] : memref<8x32xf32, #tpu.memory_space<vmem>>, vector<8x32xf32>
    %15 = arith.truncf %14 : vector<8x32xf32> to vector<8x32xbf16>
    %cst_16 = arith.constant dense<0.000000e+00> : vector<8x128xf32>
    %16 = tpu.matmul %15, %1, %cst_16 {dimension_numbers = #tpu.dot_dimension_numbers<[1], [0], [0], [1], [0, 0, 1, 1], [], []>} : vector<8x32xbf16>, vector<32x128xbf16>, vector<8x128xf32> -> vector<8x128xf32>
    %17 = arith.addf %13, %16 : vector<8x128xf32>
    %c0_17 = arith.constant 0 : index
    %c0_18 = arith.constant 0 : index
    %18 = vector.load %arg3[%c0_17, %c0_18] : memref<8x16xf32, #tpu.memory_space<vmem>>, vector<8x16xf32>
    %19 = arith.truncf %18 : vector<8x16xf32> to vector<8x16xbf16>
    %cst_19 = arith.constant dense<0.000000e+00> : vector<8x128xf32>
    %20 = tpu.matmul %19, %2, %cst_19 {dimension_numbers = #tpu.dot_dimension_numbers<[1], [0], [0], [1], [0, 0, 1, 1], [], []>} : vector<8x16xbf16>, vector<16x128xbf16>, vector<8x128xf32> -> vector<8x128xf32>
    %21 = arith.addf %17, %20 : vector<8x128xf32>
    %22 = vector.broadcast %6 : vector<1x128xf32> to vector<8x128xf32>
    %23 = arith.addf %21, %22 : vector<8x128xf32>
    %24 = tpu.iota {dimensions = array<i32: 1>} : vector<8x128xi32>
    %c32_i32 = arith.constant 32 : i32
    %25 = vector.broadcast %c32_i32 : i32 to vector<8x128xi32>
    %26 = arith.cmpi slt, %24, %25 : vector<8x128xi32>
    %27 = math.tanh %23 : vector<8x128xf32>
    %cst_20 = arith.constant 0.000000e+00 : f32
    %28 = vector.broadcast %cst_20 : f32 to vector<8x128xf32>
    %29 = arith.maximumf %23, %28 : vector<8x128xf32>
    %30 = arith.select %26, %27, %29 : vector<8x128xi1>, vector<8x128xf32>
    %31 = arith.truncf %30 : vector<8x128xf32> to vector<8x128xbf16>
    %cst_21 = arith.constant dense<0.000000e+00> : vector<8x128xf32>
    %32 = tpu.matmul %31, %3, %cst_21 {dimension_numbers = #tpu.dot_dimension_numbers<[1], [0], [0], [1], [0, 0, 1, 1], [], []>} : vector<8x128xbf16>, vector<128x128xbf16>, vector<8x128xf32> -> vector<8x128xf32>
    %33 = vector.broadcast %7 : vector<1x128xf32> to vector<8x128xf32>
    %34 = arith.addf %32, %33 : vector<8x128xf32>
    %cst_22 = arith.constant 0.000000e+00 : f32
    %35 = vector.broadcast %cst_22 : f32 to vector<8x128xf32>
    %36 = arith.maximumf %34, %35 : vector<8x128xf32>
    %37 = arith.truncf %36 : vector<8x128xf32> to vector<8x128xbf16>
    %cst_23 = arith.constant dense<0.000000e+00> : vector<8x128xf32>
    %38 = tpu.matmul %37, %4, %cst_23 {dimension_numbers = #tpu.dot_dimension_numbers<[1], [0], [0], [1], [0, 0, 1, 1], [], []>} : vector<8x128xbf16>, vector<128x128xbf16>, vector<8x128xf32> -> vector<8x128xf32>
    %39 = vector.broadcast %8 : vector<1x128xf32> to vector<8x128xf32>
    %40 = arith.addf %38, %39 : vector<8x128xf32>
    %41 = math.tanh %40 : vector<8x128xf32>
    %42 = arith.truncf %41 : vector<8x128xf32> to vector<8x128xbf16>
    %cst_24 = arith.constant dense<0.000000e+00> : vector<8x128xf32>
    %43 = tpu.matmul %42, %5, %cst_24 {dimension_numbers = #tpu.dot_dimension_numbers<[1], [0], [0], [1], [0, 0, 1, 1], [], []>} : vector<8x128xbf16>, vector<128x128xbf16>, vector<8x128xf32> -> vector<8x128xf32>
    %44 = arith.addf %34, %43 : vector<8x128xf32>
    %cst_25 = arith.constant 0.000000e+00 : f32
    %45 = vector.broadcast %cst_25 : f32 to vector<8x128xf32>
    %46 = arith.maximumf %44, %45 : vector<8x128xf32>
    %47 = vector.broadcast %9 : vector<1x128xf32> to vector<8x128xf32>
    %48 = arith.mulf %46, %47 : vector<8x128xf32>
    %cst_26 = arith.constant dense<0.000000e+00> : vector<8xf32>
    %49 = vector.multi_reduction <add>, %48, %cst_26 [1] : vector<8x128xf32> to vector<8xf32>
    %50 = vector.shape_cast %49 : vector<8xf32> to vector<8x1xf32>
    %c32_i32_27 = arith.constant 32 : i32
    %51 = vector.broadcast %c32_i32_27 : i32 to vector<8x128xi32>
    %52 = arith.cmpi slt, %24, %51 : vector<8x128xi32>
    %cst_28 = arith.constant 0.000000e+00 : f32
    %53 = vector.broadcast %cst_28 : f32 to vector<8x128xf32>
    %54 = arith.select %52, %30, %53 : vector<8x128xi1>, vector<8x128xf32>
    %55 = arith.addf %54, %41 : vector<8x128xf32>
    %c36_i32 = arith.constant 36 : i32
    %56 = vector.broadcast %c36_i32 : i32 to vector<8x128xi32>
    %57 = arith.cmpi eq, %24, %56 : vector<8x128xi32>
    %cst_29 = arith.constant 0.000000e+00 : f32
    %58 = vector.shape_cast %50 : vector<8x1xf32> to vector<8x1xf32>
    %59 = vector.broadcast %58 : vector<8x1xf32> to vector<8x128xf32>
    %60 = vector.broadcast %cst_29 : f32 to vector<8x128xf32>
    %61 = arith.select %57, %59, %60 : vector<8x128xi1>, vector<8x128xf32>
    %62 = arith.addf %55, %61 : vector<8x128xf32>
    %63 = vector.broadcast %10 : vector<1x128xf32> to vector<8x128xf32>
    %64 = arith.addf %62, %63 : vector<8x128xf32>
    %65 = arith.truncf %64 : vector<8x128xf32> to vector<8x128xbf16>
    %c0_30 = arith.constant 0 : index
    %c0_31 = arith.constant 0 : index
    %66 = vector.load %arg6[%c0_30, %c0_31] : memref<8x128xbf16, #tpu.memory_space<vmem>>, vector<8x128xbf16>
    tpu.vector_store %arg6[%c0_30, %c0_31], %65 {strides = array<i32>} : memref<8x128xbf16, #tpu.memory_space<vmem>>, vector<8x128xbf16>,
    return
  }
  func.func @transform_0(%arg0: i32) -> (i32, i32) {
    %c0_i32 = arith.constant 0 : i32
    %c0_i32_0 = arith.constant 0 : i32
    return %arg0, %c0_i32 : i32, i32
  }
  func.func @transform_1(%arg0: i32) -> (i32, i32) {
    %c0_i32 = arith.constant 0 : i32
    %c0_i32_0 = arith.constant 0 : i32
    return %arg0, %c0_i32 : i32, i32
  }
  func.func @transform_2(%arg0: i32) -> (i32, i32) {
    %c0_i32 = arith.constant 0 : i32
    %c0_i32_0 = arith.constant 0 : i32
    return %arg0, %c0_i32 : i32, i32
  }
  func.func @transform_3(%arg0: i32) -> (i32, i32) {
    %c0_i32 = arith.constant 0 : i32
    %c0_i32_0 = arith.constant 0 : i32
    %c0_i32_1 = arith.constant 0 : i32
    return %c0_i32, %c0_i32_0 : i32, i32
  }
  func.func @transform_4(%arg0: i32) -> (i32, i32) {
    %c0_i32 = arith.constant 0 : i32
    %c0_i32_0 = arith.constant 0 : i32
    %c0_i32_1 = arith.constant 0 : i32
    return %c0_i32, %c0_i32_0 : i32, i32
  }
  func.func @transform_5(%arg0: i32) -> (i32, i32) {
    %c0_i32 = arith.constant 0 : i32
    %c0_i32_0 = arith.constant 0 : i32
    return %arg0, %c0_i32 : i32, i32
  }
}

</mosaic_0001>

<bundles_post_ra>
// kernel: tpu_custom_call.1
= control target key start
LH: loop header
LB: loop body
LE: loop exit
PB: predicated region body
PF: predicated region fallthrough
CT: control target
= control target key end

     0   :  { %10 = vsyncpa [#allocation3], 0  ;;  %s1108_s0 = inlined_call_operand.hbm [shape: f32[8,32], index: 0, kind: input, shape index: {}]   ;;  %s1109_s1 = inlined_call_operand.hbm [shape: f32[8,32], index: 1, kind: input, shape index: {}]   ;;  %s1110_s2 = inlined_call_operand.hbm [shape: f32[8,16], index: 2, kind: input, shape index: {}]   ;;  %s1111_s3 = inlined_call_operand.hbm [shape: bf16[512,128], index: 3, kind: input, shape index: {}]   ;;  %s1112_s4 = inlined_call_operand.vmem [shape: f32[8,128], index: 4, kind: input, shape index: {}]   ;;  %s1113_s5 = inlined_call_operand.hbm [shape: bf16[8,128], index: 5, kind: output, shape index: {}]  }
   0x1   :  { %11 = vsyncpa [#allocation6], 0 }
   0x2   :  { %12 = vsyncpa [#allocation9], 0 }
   0x3   :  { %13 = vsyncpa [#allocation4], 0  ;;  %s942_s18 = smov [#allocation5]   ;;  %s943_s20 = smov [#allocation2]  }
   0x4   :  { %s30_s19 = sshll.u32 %s942_s18, 4  ;;  %s20_s21 = sshll.u32 %s943_s20, 4  ;;  %s31_s19 = int_to_ptr.vmem [resolvable:$true] %s30_s19  ;;  %s21_s21 = int_to_ptr.vmem [resolvable:$true] %s20_s21 }
   0x5   :  { %s824_s24 = scalar_lea.hbm %s1109_s1, 128 }
   0x6   :  { %p825_p0 = scmp.ne.s32.totalorder %s1109_s1, %s824_s24  ;;  %p828_p1 = scmp.lt.u32.totalorder %s824_s24, %s1109_s1 }
   0x8   :  { %p830_p2 = pnand %p828_p1, %p825_p0 }
   0xa   :  { %833 = shalt.err (!%p830_p2)
}
   0xb   :  { %s834_s29 = scalar_lea.vmem %s31_s19, 128  ;;  %p839_p4 = scmp.lt.s32.totalorder %s31_s19, %s31_s19 }
   0xc   :  { %p835_p3 = scmp.ne.s32.totalorder %s31_s19, %s834_s29  ;;  %p840_p5 = scmp.lt.s32.totalorder %s834_s29, %s834_s29 }
   0xe   :  { %p841_p6 = por %p840_p5, %p839_p4 }
  0x10   :  { %p842_p7 = pnand %p841_p6, %p835_p3 }
  0x12   :  { %845 = shalt.err (!%p842_p7)
}
  0x13   :  { %33 = dma.hbm_to_vmem [thread:$0]  %s1109_s1, 128, %s31_s19, [#allocation6]  }
  0x14   :  { %s846_s9 = scalar_lea.hbm %s1108_s0, 128 }
  0x15   :  { %p847_p8 = scmp.ne.s32.totalorder %s1108_s0, %s846_s9  ;;  %p850_p9 = scmp.lt.u32.totalorder %s846_s9, %s1108_s0 }
  0x17   :  { %p852_p10 = pnand %p850_p9, %p847_p8 }
  0x19   :  { %855 = shalt.err (!%p852_p10)
}
  0x1a   :  { %s856_s14 = scalar_lea.vmem %s21_s21, 128  ;;  %p861_p12 = scmp.lt.s32.totalorder %s21_s21, %s21_s21 }
  0x1b   :  { %p857_p11 = scmp.ne.s32.totalorder %s21_s21, %s856_s14  ;;  %p862_p13 = scmp.lt.s32.totalorder %s856_s14, %s856_s14 }
  0x1d   :  { %p863_p0 = por %p862_p13, %p861_p12 }
  0x1f   :  { %p864_p1 = pnand %p863_p0, %p857_p11 }
  0x21   :  { %867 = shalt.err (!%p864_p1)
}
  0x22   :  { %23 = dma.hbm_to_vmem [thread:$0]  %s1108_s0, 128, %s21_s21, [#allocation3]  }
  0x23   :  { %s944_s16 = smov [#allocation7]   ;;  %s945_s18 = smov [#allocation8]  }
  0x24   :  { %s40_s17 = sshll.u32 %s944_s16, 4  ;;  %s49_s19 = sshll.u32 %s945_s18, 4  ;;  %s41_s17 = int_to_ptr.vmem [resolvable:$true] %s40_s17  ;;  %s1005_s19 = int_to_ptr.vmem [resolvable:$true] %s49_s19 }
  0x25   :  { %s868_s23 = scalar_lea.hbm %s1110_s2, 128 }
  0x26   :  { %p869_p2 = scmp.ne.s32.totalorder %s1110_s2, %s868_s23  ;;  %p872_p3 = scmp.lt.u32.totalorder %s868_s23, %s1110_s2 }
  0x28   :  { %p874_p4 = pnand %p872_p3, %p869_p2 }
  0x2a   :  { %877 = shalt.err (!%p874_p4)
}
  0x2b   :  { %s878_s0 = scalar_lea.vmem %s41_s17, 128  ;;  %p883_p6 = scmp.lt.s32.totalorder %s41_s17, %s41_s17 }
  0x2c   :  { %p879_p5 = scmp.ne.s32.totalorder %s41_s17, %s878_s0  ;;  %p884_p7 = scmp.lt.s32.totalorder %s878_s0, %s878_s0 }
  0x2e   :  { %p885_p8 = por %p884_p7, %p883_p6 }
  0x30   :  { %p886_p9 = pnand %p885_p8, %p879_p5 }
  0x32   :  { %889 = shalt.err (!%p886_p9)
}
  0x33   :  { %43 = dma.hbm_to_vmem [thread:$0]  %s1110_s2, 128, %s41_s17, [#allocation6]  }
  0x34   :  { %s890_s6 = scalar_lea.hbm %s1111_s3, 4096 }
  0x35   :  { %p891_p10 = scmp.ne.s32.totalorder %s1111_s3, %s890_s6  ;;  %p894_p11 = scmp.lt.u32.totalorder %s890_s6, %s1111_s3 }
  0x37   :  { %p896_p12 = pnand %p894_p11, %p891_p10 }
  0x39   :  { %899 = shalt.err (!%p896_p12)
}
  0x3a   :  { %s900_s11 = scalar_lea.vmem %s1005_s19, 4096  ;;  %p905_p0 = scmp.lt.s32.totalorder %s1005_s19, %s1005_s19 }
  0x3b   :  { %p901_p13 = scmp.ne.s32.totalorder %s1005_s19, %s900_s11  ;;  %p906_p1 = scmp.lt.s32.totalorder %s900_s11, %s900_s11 }
  0x3d   :  { %p907_p2 = por %p906_p1, %p905_p0 }
  0x3f   :  { %p908_p3 = pnand %p907_p2, %p901_p13 }
  0x41   :  { %911 = shalt.err (!%p908_p3)
}
  0x42   :  { %s946_s2 = smov 64   ;;  %s947_s12 = smov 4  }
  0x43   :  { %55 = dma.hbm_to_vmem [thread:$0]  %s1111_s3, 4096, %s1005_s19, [#allocation9], %s946_s2, %s946_s2, %s947_s12  }
  0x44   :  { %934 = dma.done.wait [#allocation3], 128  }
  0x45   :  { %935 = vsyncadd [#allocation3], 4294967168 }
  0x46   :  { %936 = dma.done.wait [#allocation6], 256  }
  0x47   :  { %937 = vsyncadd [#allocation6], 4294967040 }
  0x48   :  { %938 = dma.done.wait [#allocation9], 4096  }
  0x49   :  { %939 = vsyncadd [#allocation9], 4294963200  ;;  %v948_v0 = vmov 0.0   ;;  %vm949_vm0 = vmmov 0   ;;  %v791_v1 = vld [vmem:[#allocation8 + $0x10] sm:$0xff]   ;;  %v792_v2 = vld [vmem:[#allocation8 + $0x18] sm:$0xff]   ;;  %v307_v42 = vlaneseq }
  0x4a   :  { %700 = vmatprep.subr.bf16.mxu0 %v948_v0  ;;  %704 = vmatprep.mubr.msk.bf16.mxu0 %vm949_vm0, %v948_v0  ;;  %v136_v3 = vld [vmem:[#allocation5] sm:$0xff]  ;;  %vm150_vm1 = vcmask 261120   ;;  %v793_v5 = vld [vmem:[#allocation8] sm:$0xff]   ;;  %v794_v6 = vld [vmem:[#allocation8 + $0x8] sm:$0xff]   ;;  %vm257_vm2 = vcmask 130048   ;;  %s950_s24 = smov [#allocation10]  }
  0x4b   :  { %722 = vmatprep.subr.bf16.mxu1 %v948_v0  ;;  %738 = vmatprep.mubr.msk.bf16.mxu1 %vm949_vm0, %v948_v0  ;;  %v137_v4 = vpack.c.bf16 %v136_v3, %v136_v3  ;;  %v134_v7 = vld [vmem:[#allocation2] sm:$0xff]  ;;  %v795_v8 = vld [vmem:[#allocation8 + $0x20] sm:$0xff]   ;;  %v249_v10 = vld [vmem:[#allocation7] sm:$0xff]  ;;  %v1070_v43 = vand.u32 127, %v307_v42  ;;  %s617_s25 = sshll.u32 %s950_s24, 4  ;;  %s618_s25 = int_to_ptr.vmem [resolvable:$true] %s617_s25 }
  0x4c   :  { %701 = vmatpush3.bf16.msra.mxu0 %v791_v1  ;;  %v135_v9 = vpack.c.bf16 %v134_v7, %v134_v7  ;;  %v250_v11 = vpack.c.bf16 %v249_v10, %v249_v10  ;;  %v796_v12 = vld [vmem:[#allocation8 + $0x40] sm:$0xff]   ;;  %v797_v13 = vld [vmem:[#allocation8 + $0x48] sm:$0xff]   ;;  %v798_v14 = vld [vmem:[#allocation8 + $0x50] sm:$0xff]   ;;  %s912_s26 = scalar_lea.vmem %s618_s25, 64  ;;  %p917_p5 = scmp.lt.s32.totalorder %s618_s25, %s618_s25 }
  0x4d   :  { %702 = vmatprep.subr.bf16.mxu0 %v948_v0  ;;  %723 = vmatpush3.bf16.msra.mxu1 %v796_v12  ;;  %v799_v15 = vld [vmem:[#allocation8 + $0x58] sm:$0xff]   ;;  %v800_v16 = vld [vmem:[#allocation8 + $0x60] sm:$0xff]   ;;  %v801_v17 = vld [vmem:[#allocation8 + $0x68] sm:$0xff]   ;;  %vm309_vm3 = vcmp.lt.s32.totalorder %v1070_v43, 32  ;;  %vm601_vm4 = vcmp.eq.s32.totalorder %v1070_v43, 36  ;;  %p913_p4 = scmp.ne.s32.totalorder %s618_s25, %s912_s26  ;;  %p918_p6 = scmp.lt.s32.totalorder %s912_s26, %s912_s26 }
  0x4e   :  { %724 = vmatprep.subr.bf16.mxu1 %v948_v0  ;;  %v802_v18 = vld [vmem:[#allocation8 + $0x70] sm:$0xff]   ;;  %v803_v19 = vld [vmem:[#allocation8 + $0x78] sm:$0xff]   ;;  %v804_v20 = vld [vmem:[#allocation8 + $0x80] sm:$0xff]  }
  0x4f   :  { %v805_v21 = vld [vmem:[#allocation8 + $0x88] sm:$0xff]   ;;  %v806_v22 = vld [vmem:[#allocation8 + $0x90] sm:$0xff]   ;;  %v807_v23 = vld [vmem:[#allocation8 + $0x98] sm:$0xff]   ;;  %p919_p7 = por %p918_p6, %p917_p5 }
  0x50   :  { %703 = vmatpush3.bf16.msra.mxu0 %v792_v2  ;;  %v808_v24 = vld [vmem:[#allocation8 + $0xa0] sm:$0xff]   ;;  %v809_v25 = vld [vmem:[#allocation8 + $0xa8] sm:$0xff]   ;;  %v810_v49 = vld [vmem:[#allocation8 + $0xb0] sm:$0xff]  }
  0x51   :  { %708 = vmatprep.subr.bf16.mxu0 %v948_v0  ;;  %725 = vmatpush3.bf16.msra.mxu1 %v797_v13  ;;  %v636_v35 = vld [vmem:[%s1112_s4] ss:$0 sm:$0xff]  ;;  %v811_v50 = vld [vmem:[#allocation8 + $0xb8] sm:$0xff]   ;;  %v812_v51 = vld [vmem:[#allocation8 + $0xc0] sm:$0xff]   ;;  %p920_p8 = pnand %p919_p7, %p913_p4 }
  0x52   :  { %726 = vmatprep.subr.bf16.mxu1 %v948_v0  ;;  %v813_v52 = vld [vmem:[#allocation8 + $0xc8] sm:$0xff]   ;;  %v814_v53 = vld [vmem:[#allocation8 + $0xd0] sm:$0xff]   ;;  %v815_v54 = vld [vmem:[#allocation8 + $0xd8] sm:$0xff]  }
  0x53   :  { %705 = vmatmul.mubr.msk.bf16.vlgmr.msra.gmra.mrb[0].mxu0 %vm150_vm1, %v137_v4  ;;  %v637_v55 = vld [vmem:[%s1112_s4 + $0x1] ss:$0 sm:$0xff]  ;;  %v816_v63 = vld [vmem:[#allocation8 + $0xe0] sm:$0xff]   ;;  %v818_v2 = vld [vmem:[#allocation8 + $0xf0] sm:$0xff]  }
  0x54   :  { %709 = vmatpush3.bf16.msra.mxu0 %v793_v5  ;;  %712 = vmatprep.mubr.msk.bf16.mxu0 %vm949_vm0, %v948_v0  ;;  %v817_v1 = vld [vmem:[#allocation8 + $0xe8] sm:$0xff]   ;;  %v819_v3 = vld [vmem:[#allocation8 + $0xf8] sm:$0xff]  }
  0x55   :  { %710 = vmatprep.subr.bf16.mxu0 %v948_v0  ;;  %727 = vmatpush3.bf16.msra.mxu1 %v798_v14  ;;  %v646_v4 = vld [vmem:[%s1112_s4 + $0x2] ss:$0 sm:$0xff] }
  0x56   :  { %728 = vmatprep.subr.bf16.mxu1 %v948_v0 }
  0x58   :  { %711 = vmatpush3.bf16.msra.mxu0 %v794_v6 }
  0x59   :  { %716 = vmatprep.subr.bf16.mxu0 %v948_v0  ;;  %729 = vmatpush3.bf16.msra.mxu1 %v799_v15 }
  0x5a   :  { %730 = vmatprep.subr.bf16.mxu1 %v948_v0 }
  0x5b   :  { %713 = vmatmul.mubr.msk.bf16.vlgmr.msra.gmra.mrb[4].mxu0 %vm150_vm1, %v135_v9 }
  0x5c   :  { %717 = vmatpush3.bf16.msra.mxu0 %v795_v8  ;;  %718 = vmatprep.mubr.msk.bf16.mxu0 %vm949_vm0, %v948_v0 }
  0x5d   :  { %742 = vmatprep.subr.bf16.mxu0 %v948_v0  ;;  %731 = vmatpush3.bf16.msra.mxu1 %v800_v16 }
  0x5e   :  { %732 = vmatprep.subr.bf16.mxu1 %v948_v0 }
  0x61   :  { %733 = vmatpush3.bf16.msra.mxu1 %v801_v17 }
  0x62   :  { %734 = vmatprep.subr.bf16.mxu1 %v948_v0 }
  0x63   :  { %719 = vmatmul.mubr.msk.bf16.vlgmr.msra.gmra.mrb[8].mxu0 %vm257_vm2, %v250_v11 }
  0x64   :  { %758 = vmatprep.mubr.msk.bf16.mxu0 %vm949_vm0, %v948_v0  ;;  %743 = vmatpush3.bf16.msra.mxu0 %v804_v20 }
  0x65   :  { %735 = vmatpush3.bf16.msra.mxu1 %v802_v18  ;;  %744 = vmatprep.subr.bf16.mxu0 %v948_v0 }
  0x66   :  { %736 = vmatprep.subr.bf16.mxu1 %v948_v0 }
  0x68   :  { %745 = vmatpush3.bf16.msra.mxu0 %v805_v21  ;;  %v664_v21 = vld [vmem:[%s1112_s4 + $0x4] ss:$0 sm:$0xff] }
  0x69   :  { %737 = vmatpush3.bf16.msra.mxu1 %v803_v19  ;;  %746 = vmatprep.subr.bf16.mxu0 %v948_v0 }
  0x6a   :  { %762 = vmatprep.subr.bf16.mxu1 %v948_v0 }
  0x6c   :  { %747 = vmatpush3.bf16.msra.mxu0 %v806_v22 }
  0x6d   :  { %748 = vmatprep.subr.bf16.mxu0 %v948_v0 }
  0x70   :  { %749 = vmatpush3.bf16.msra.mxu0 %v807_v23 }
  0x71   :  { %750 = vmatprep.subr.bf16.mxu0 %v948_v0 }
  0x74   :  { %751 = vmatpush3.bf16.msra.mxu0 %v808_v24 }
  0x75   :  { %752 = vmatprep.subr.bf16.mxu0 %v948_v0 }
  0x78   :  { %753 = vmatpush3.bf16.msra.mxu0 %v809_v25 }
  0x79   :  { %754 = vmatprep.subr.bf16.mxu0 %v948_v0 }
  0x7c   :  { %755 = vmatpush3.bf16.msra.mxu0 %v810_v49 }
  0x7d   :  { %756 = vmatprep.subr.bf16.mxu0 %v948_v0 }
  0x80   :  { %757 = vmatpush3.bf16.msra.mxu0 %v811_v50 }
 0x126   :  { %v188_v26 = vpop.f32.mrb[0].mxu0 }
 0x127   :  { %v706_v27 = vpop.f32.mrb[1].mxu0 }
 0x128   :  { %v191_v28 = vpop.f32.mrb[2].mxu0 }
 0x129   :  { %v707_v29 = vpop.f32.mrb[3].mxu0 }
 0x12e   :  { %v243_v30 = vpop.f32.mrb[4].mxu0 }
 0x12f   :  { %v244_v31 = vadd.f32 %v243_v30, %v188_v26  ;;  %v714_v32 = vpop.f32.mrb[5].mxu0 }
 0x130   :  { %v246_v33 = vpop.f32.mrb[6].mxu0 }
 0x131   :  { %v715_v34 = vpop.f32.mrb[7].mxu0 }
 0x136   :  { %v295_v36 = vpop.f32.mrb[8].mxu0 }
 0x137   :  { %v301_v37 = vadd.f32 %v295_v36, %v244_v31  ;;  %v720_v38 = vpop.f32.mrb[9].mxu0 }
 0x138   :  { %v298_v39 = vpop.f32.mrb[10].mxu0 }
 0x139   :  { %v306_v40 = vadd.f32 %v636_v35, %v301_v37  ;;  %v721_v41 = vpop.f32.mrb[11].mxu0 }
 0x13b   :  { %820 = vtanh.f32 %v306_v40  ;;  %v311_v44 = vmax.f32 %v306_v40, 0.0 }
 0x145   :  { %v821_v45 = vpop.eup %820 }
 0x146   :  { %v312_v46 = vsel %vm309_vm3, %v821_v45, %v311_v44  ;;  %v599_v47 = vsel %vm309_vm3, %v821_v45, 0.0 }
 0x147   :  { %v313_v48 = vpack.c.bf16 %v312_v46, %v312_v46 }
 0x149   :  { %739 = vmatmul.mubr.bf16.vlgmr.msra.gmra.mrb[0].mxu1 %v313_v48 }
 0x14a   :  { %778 = vmatprep.mubr.msk.bf16.mxu1 %vm949_vm0, %v948_v0  ;;  %763 = vmatpush3.bf16.msra.mxu1 %v812_v51 }
 0x14b   :  { %764 = vmatprep.subr.bf16.mxu1 %v948_v0 }
 0x14e   :  { %765 = vmatpush3.bf16.msra.mxu1 %v813_v52 }
 0x14f   :  { %766 = vmatprep.subr.bf16.mxu1 %v948_v0 }
 0x152   :  { %767 = vmatpush3.bf16.msra.mxu1 %v814_v53 }
 0x153   :  { %768 = vmatprep.subr.bf16.mxu1 %v948_v0 }
 0x156   :  { %769 = vmatpush3.bf16.msra.mxu1 %v815_v54 }
 0x157   :  { %770 = vmatprep.subr.bf16.mxu1 %v948_v0 }
 0x15a   :  { %771 = vmatpush3.bf16.msra.mxu1 %v816_v63 }
 0x15b   :  { %772 = vmatprep.subr.bf16.mxu1 %v948_v0 }
 0x15e   :  { %773 = vmatpush3.bf16.msra.mxu1 %v817_v1 }
 0x15f   :  { %774 = vmatprep.subr.bf16.mxu1 %v948_v0 }
 0x162   :  { %775 = vmatpush3.bf16.msra.mxu1 %v818_v2 }
 0x163   :  { %776 = vmatprep.subr.bf16.mxu1 %v948_v0  ;;  %v663_v0 = vld [vmem:[%s1112_s4 + $0x3] ss:$0 sm:$0xff] }
 0x166   :  { %777 = vmatpush3.bf16.msra.mxu1 %v819_v3 }
 0x21c   :  { %v400_v56 = vpop.f32.mrb[0].mxu1 }
 0x21d   :  { %v401_v57 = vadd.f32 %v637_v55, %v400_v56  ;;  %v740_v58 = vpop.f32.mrb[1].mxu1 }
 0x21e   :  { %v403_v59 = vpop.f32.mrb[2].mxu1 }
 0x21f   :  { %v406_v60 = vmax.f32 %v401_v57, 0.0  ;;  %v741_v61 = vpop.f32.mrb[3].mxu1 }
 0x221   :  { %v407_v62 = vpack.c.bf16 %v406_v60, %v406_v60 }
 0x223   :  { %759 = vmatmul.mubr.bf16.vlgmr.msra.gmra.mrb[12].mxu0 %v407_v62 }
 0x2f6   :  { %v494_v5 = vpop.f32.mrb[12].mxu0 }
 0x2f7   :  { %v495_v6 = vadd.f32 %v646_v4, %v494_v5  ;;  %v760_v7 = vpop.f32.mrb[13].mxu0 }
 0x2f8   :  { %v497_v8 = vpop.f32.mrb[14].mxu0 }
 0x2f9   :  { %822 = vtanh.f32 %v495_v6  ;;  %v761_v9 = vpop.f32.mrb[15].mxu0 }
 0x303   :  { %v823_v10 = vpop.eup %822 }
 0x304   :  { %v501_v11 = vpack.c.bf16 %v823_v10, %v823_v10  ;;  %v600_v12 = vadd.f32 %v823_v10, %v599_v47 }
 0x306   :  { %779 = vmatmul.mubr.bf16.vlgmr.msra.gmra.mrb[4].mxu1 %v501_v11 }
 0x3d9   :  { %v584_v13 = vpop.f32.mrb[4].mxu1 }
 0x3da   :  { %v590_v14 = vadd.f32 %v584_v13, %v401_v57  ;;  %v780_v15 = vpop.f32.mrb[5].mxu1 }
 0x3db   :  { %v587_v16 = vpop.f32.mrb[6].mxu1 }
 0x3dc   :  { %v591_v17 = vmax.f32 %v590_v14, 0.0  ;;  %v781_v18 = vpop.f32.mrb[7].mxu1 }
 0x3de   :  { %v596_v19 = vmul.f32 %v663_v0, %v591_v17 }
 0x3e0   :  { %597 = vadd.xlane.f32.xlu0 %v596_v19 }
 0x46d   :  { %v598_v20 = vpop.xlane.xlu0 %597 }
 0x46e   :  { %v602_v22 = vsel %vm601_vm4, %v598_v20, 0.0 }
 0x46f   :  { %v603_v23 = vadd.f32 %v602_v22, %v600_v12 }
 0x471   :  { %v608_v24 = vadd.f32 %v664_v21, %v603_v23 }
 0x473   :  { %v609_v25 = vpack.c.bf16 %v608_v24, %v608_v24 }
 0x475   :  { %610 = vst [vmem:[#allocation10] sm:$0xf] %v609_v25 }
 0x476   :  { %923 = shalt.err (!%p920_p8)
}
 0x477   :  { %s924_s21 = scalar_lea.hbm %s1113_s5, 64 }
 0x478   :  { %p925_p9 = scmp.ne.s32.totalorder %s1113_s5, %s924_s21  ;;  %p928_p10 = scmp.lt.u32.totalorder %s924_s21, %s1113_s5 }
 0x47a   :  { %p930_p11 = pnand %p928_p10, %p925_p9 }
 0x47c   :  { %933 = shalt.err (!%p930_p11)
}
 0x47d   :  { %620 = dma.vmem_to_hbm [thread:$0]  %s618_s25, 64, %s1113_s5, [#allocation4]  }
 0x47e   :  { %940 = dma.done.wait [#allocation4], 64  }
 0x47f   :  { %941 = vsyncadd [#allocation4], 4294967232 }
 0x480   :  { %624 = vsyncpa [#allocation3], 1 }
 0x481   :  { %625 = vsyncpa [#allocation6], 1 }
 0x482   :  { %626 = vsyncpa [#allocation9], 1 }
 0x483   :  { %627 = vsyncpa [#allocation4], 1 }

</bundles_post_ra>
